<compile_context>
chip_gen: v5e
topology: v5e:2x2
jax: 0.10.0
libtpu: 0.0.40
codegen_flags: <defaults>
</compile_context>

<pallas_src>
import functools

import jax
import jax.numpy as jnp
from jax.experimental import pallas as pl
from jax.experimental.pallas import tpu as pltpu


# ----------------------------------------------------------------------------
# VMEM-budget-aware tiling
# ----------------------------------------------------------------------------
def _vmem_capacity_bytes() -> int:
    try:
        return int(pltpu.get_tpu_info().vmem_capacity_bytes)
    except Exception:
        return 64 * 1024 * 1024  # conservative fallback: v7x per-core VMEM


def _pick_tiles(B: int, Cin: int, Cout: int, *, n_weight_streams: int,
                itemsize: int = 4):
    """Pick (tb, tn, vmem_limit_bytes) so double-buffered blocks fit VMEM."""
    cap = _vmem_capacity_bytes()
    budget = int(cap * 0.45)          # leave headroom for compiler scratch
    vmem_limit = int(cap * 0.7)

    # Batch tile: full batch if small, else 512 (multiple of 8 sublanes).
    tb = B if B <= 512 else 512

    def est(tn: int) -> int:
        w_bytes = n_weight_streams * Cin * tn * itemsize   # weight streams
        x_bytes = tb * Cin * itemsize
        y_bytes = tb * tn * itemsize
        return 2 * (w_bytes + x_bytes + y_bytes) + (1 << 20)  # x2 double-buffer

    if Cout < 128:                    # tiny models: one full (legal) block
        return tb, Cout, vmem_limit

    cands = [t for t in (512, 256, 128) if t <= Cout and est(t) <= budget]
    if not cands:
        tn = 128                      # smallest lane-dense tile; limit raised below
    else:
        # Prefer >=2 Cout tiles so both v7x TensorCores get "parallel" work.
        multi = [t for t in cands if pl.cdiv(Cout, t) >= 2]
        tn = multi[0] if multi else cands[0]
    return tb, tn, vmem_limit


# ----------------------------------------------------------------------------
# Pallas kernels
# ----------------------------------------------------------------------------
def _fused_train_kernel(ema_w_ref, w_ref, ema_b_ref, b_ref, x_ref, gamma_ref,
                        new_ema_w_ref, new_ema_b_ref, y_ref):
    """One (Cout-tile, batch-tile) step: EMA update (VPU) + y = x @ W + b (MXU)."""
    w = w_ref[...]                                # (Cin, tn) f32, [in, out] layout
    b = b_ref[...]                                # (1, tn)   f32

    # EMA update (lerp form, pure f32, one multiply). The weight/bias blocks
    # are resident across the inner batch axis, so compute it only once.
    @pl.when(pl.program_id(1) == 0)
    def _():
        one_minus_g = 1.0 - gamma_ref[0]          # SMEM scalar -> no recompiles
        new_ema_w_ref[...] = (ema_w_ref[...]
                              + one_minus_g * (w - ema_w_ref[...])
                              ).astype(new_ema_w_ref.dtype)
        new_ema_b_ref[...] = (ema_b_ref[...]
                              + one_minus_g * (b - ema_b_ref[...])
                              ).astype(new_ema_b_ref.dtype)

    # bf16 MXU matmul, f32 accumulation.
    acc = jnp.dot(x_ref[...].astype(jnp.bfloat16), w.astype(jnp.bfloat16),
                  preferred_element_type=jnp.float32)
    y_ref[...] = (acc + b).astype(y_ref.dtype)


def _linear_kernel(w_ref, b_ref, x_ref, y_ref):
    """Eval path: y = x @ W_ema + b_ema for one (Cout-tile, batch-tile)."""
    acc = jnp.dot(x_ref[...].astype(jnp.bfloat16),
                  w_ref[...].astype(jnp.bfloat16),
                  preferred_element_type=jnp.float32)
    y_ref[...] = (acc + b_ref[...]).astype(y_ref.dtype)


# ----------------------------------------------------------------------------
# pallas_call wrappers
# ----------------------------------------------------------------------------
@functools.partial(jax.jit, donate_argnums=(0, 2))
def fused_train_step(ema_w_t, w_t, ema_b2, b2, x, gamma):
    """Single fused launch: (new_ema_w, new_ema_b, y) = EMA update + forward."""
    Cin, Cout = w_t.shape
    B = x.shape[0]
    tb, tn, vmem_limit = _pick_tiles(B, Cin, Cout, n_weight_streams=3)
    grid = (pl.cdiv(Cout, tn), pl.cdiv(B, tb))    # Cout outer, batch inner

    cost = pl.CostEstimate(
        flops=2 * B * Cin * Cout, transcendentals=0,
        bytes_accessed=4 * (3 * Cin * Cout + B * Cin + B * Cout + 3 * Cout) + 4)

    return pl.pallas_call(
        _fused_train_kernel,
        grid=grid,
        in_specs=[
            pl.BlockSpec((Cin, tn), lambda j, b: (0, j)),        # ema_w (aliased)
            pl.BlockSpec((Cin, tn), lambda j, b: (0, j)),        # live w
            pl.BlockSpec((1, tn), lambda j, b: (0, j)),          # ema_b (aliased)
            pl.BlockSpec((1, tn), lambda j, b: (0, j)),          # live b
            pl.BlockSpec((tb, Cin), lambda j, b: (b, 0)),        # x
            pl.BlockSpec(memory_space=pltpu.MemorySpace.SMEM),   # gamma scalar
        ],
        out_specs=[
            pl.BlockSpec((Cin, tn), lambda j, b: (0, j)),        # new_ema_w
            pl.BlockSpec((1, tn), lambda j, b: (0, j)),          # new_ema_b
            pl.BlockSpec((tb, tn), lambda j, b: (b, j)),         # y
        ],
        out_shape=[
            jax.ShapeDtypeStruct((Cin, Cout), ema_w_t.dtype),
            jax.ShapeDtypeStruct((1, Cout), ema_b2.dtype),
            jax.ShapeDtypeStruct((B, Cout), x.dtype),
        ],
        # ema_w -> new_ema_w, ema_b -> new_ema_b updated in place.
        input_output_aliases={0: 0, 2: 1},
        cost_estimate=cost,
        compiler_params=pltpu.CompilerParams(
            dimension_semantics=("parallel", "arbitrary"),
            vmem_limit_bytes=vmem_limit),
    )(ema_w_t, w_t, ema_b2, b2, x, gamma)


@jax.jit
def linear_forward(w_t, b2, x):
    """Eval-mode forward through (EMA) linear params: y = x @ W + b."""
    Cin, Cout = w_t.shape
    B = x.shape[0]
    tb, tn, vmem_limit = _pick_tiles(B, Cin, Cout, n_weight_streams=1)
    grid = (pl.cdiv(Cout, tn), pl.cdiv(B, tb))

    cost = pl.CostEstimate(
        flops=2 * B * Cin * Cout, transcendentals=0,
        bytes_accessed=4 * (Cin * Cout + B * Cin + B * Cout + Cout))

    return pl.pallas_call(
        _linear_kernel,
        grid=grid,
        in_specs=[
            pl.BlockSpec((Cin, tn), lambda j, b: (0, j)),        # w
            pl.BlockSpec((1, tn), lambda j, b: (0, j)),          # b
            pl.BlockSpec((tb, Cin), lambda j, b: (b, 0)),        # x
        ],
        out_specs=pl.BlockSpec((tb, tn), lambda j, b: (b, j)),
        out_shape=jax.ShapeDtypeStruct((B, Cout), x.dtype),
        cost_estimate=cost,
        compiler_params=pltpu.CompilerParams(
            dimension_semantics=("parallel", "parallel"),
            vmem_limit_bytes=vmem_limit),
    )(w_t, b2, x)


# ----------------------------------------------------------------------------
# EMAModel wrapper (glue in plain JAX / Python)
# ----------------------------------------------------------------------------
class EMAModel:
    """JAX/Pallas port of the PyTorch EMAModel wrapping a Linear model."""

    def __init__(self, weight: jax.Array, bias: jax.Array, gamma: float):
        # gamma as a device scalar so decay schedules don't trigger recompiles.
        self.gamma = jnp.asarray([gamma], dtype=jnp.float32)
        # Internal [Cin, Cout] layout (transposed once) -> plain MXU x @ W.
        self.w_t = jnp.asarray(weight, dtype=jnp.float32).T
        self.b2 = jnp.asarray(bias, dtype=jnp.float32).reshape(1, -1)
        # deepcopy of the model -> EMA params start as an independent copy.
        self.ema_w_t = jnp.array(self.w_t, copy=True)
        self.ema_b2 = jnp.array(self.b2, copy=True)
        self.training = True
        # TODO(synk): torch.distributed.all_reduce is imported but unused in
        # the reference module; no collective is emitted here.

    # torch-layout convenience views ----------------------------------------
    @property
    def w(self) -> jax.Array:               # [out, in]
        return self.w_t.T

    @w.setter
    def w(self, value: jax.Array):
        self.w_t = jnp.asarray(value, dtype=jnp.float32).T

    @property
    def b(self) -> jax.Array:
        return self.b2.reshape(-1)

    @b.setter
    def b(self, value: jax.Array):
        self.b2 = jnp.asarray(value, dtype=jnp.float32).reshape(1, -1)

    @property
    def ema_w(self) -> jax.Array:           # [out, in]
        return self.ema_w_t.T

    @property
    def ema_b(self) -> jax.Array:
        return self.ema_b2.reshape(-1)

    # forward ----------------------------------------------------------------
    def __call__(self, x: jax.Array) -> jax.Array:
        if not self.training:
            return linear_forward(self.ema_w_t, self.ema_b2, x)
        new_ema_w_t, new_ema_b2, y = fused_train_step(
            self.ema_w_t, self.w_t, self.ema_b2, self.b2, x, self.gamma)
        self.ema_w_t, self.ema_b2 = new_ema_w_t, new_ema_b2
        return y


# ----------------------------------------------------------------------------
# Demo / self-test
# ----------------------------------------------------------------------------
if __name__ == "__main__":
    key = jax.random.PRNGKey(0)
    k_x, k_w, k_b = jax.random.split(key, 3)

    batch, hidden = 8, 32
    gamma = 0.99

    x = jax.random.normal(k_x, (batch, hidden), dtype=jnp.float32)
    w = jax.random.normal(k_w, (hidden, hidden), dtype=jnp.float32) * 0.1
    b = jax.random.normal(k_b, (hidden,), dtype=jnp.float32) * 0.1

    model = EMAModel(w, b, gamma)

    # Pretend the live model was trained a bit (so the EMA update is non-trivial).
    model.w = model.w + 0.05
    model.b = model.b - 0.05
    live_w = model.w
    live_b = model.b

    # --- training-mode forward: fused EMA update + live-model forward ---
    model.training = True
    y_train = model(x)
    jax.block_until_ready(y_train)

    # --- eval-mode forward: EMA model forward ---
    model.training = False
    y_eval = model(x)
    jax.block_until_ready(y_eval)

    # Reference (pure JAX, f32) check of exact semantics.
    ref_ema_w = gamma * w + (1.0 - gamma) * live_w
    ref_ema_b = gamma * b + (1.0 - gamma) * live_b
    ref_train = x @ live_w.T + live_b
    ref_eval = x @ ref_ema_w.T + ref_ema_b

    # Matmul runs in bf16 on the MXU -> relaxed tolerance for y; EMA is f32.
    assert jnp.allclose(y_train, ref_train, atol=5e-2, rtol=5e-2)
    assert jnp.allclose(model.ema_w, ref_ema_w, atol=1e-5, rtol=1e-5)
    assert jnp.allclose(model.ema_b, ref_ema_b, atol=1e-5, rtol=1e-5)
    assert jnp.allclose(y_eval, ref_eval, atol=5e-2, rtol=5e-2)

    print("KERNEL_OK")
</pallas_src>

<mosaic_0001>
module attributes {stable_mosaic.version = 11 : i64} {
  func.func @_fused_train_kernel(%arg0: i32, %arg1: i32, %arg2: memref<32x32xf32, #tpu.memory_space<vmem>>, %arg3: memref<32x32xf32, #tpu.memory_space<vmem>>, %arg4: memref<1x32xf32, #tpu.memory_space<vmem>>, %arg5: memref<1x32xf32, #tpu.memory_space<vmem>>, %arg6: memref<8x32xf32, #tpu.memory_space<vmem>>, %arg7: memref<1xf32, #tpu.memory_space<smem>>, %arg8: memref<32x32xf32, #tpu.memory_space<vmem>>, %arg9: memref<1x32xf32, #tpu.memory_space<vmem>>, %arg10: memref<8x32xf32, #tpu.memory_space<vmem>>) attributes {dimension_semantics = [#tpu.dimension_semantics<parallel>, #tpu.dimension_semantics<arbitrary>], iteration_bounds = array<i64: 1, 1>, scalar_prefetch = 0 : i64, scratch_operands = 0 : i64, tpu.core_type = #tpu.core_type<tc>, window_params = [{transform_indices = @transform_0, window_bounds = array<i64: 32, 32>}, {transform_indices = @transform_1, window_bounds = array<i64: 32, 32>}, {transform_indices = @transform_2, window_bounds = array<i64: 1, 32>}, {transform_indices = @transform_3, window_bounds = array<i64: 1, 32>}, {transform_indices = @transform_4, window_bounds = array<i64: 8, 32>}, {transform_indices = @transform_5, window_bounds = array<i64: 1>}, {transform_indices = @transform_6, window_bounds = array<i64: 32, 32>}, {transform_indices = @transform_7, window_bounds = array<i64: 1, 32>}, {transform_indices = @transform_8, window_bounds = array<i64: 8, 32>}]} {
    %c0 = arith.constant 0 : index
    %c0_0 = arith.constant 0 : index
    %0 = vector.load %arg3[%c0, %c0_0] : memref<32x32xf32, #tpu.memory_space<vmem>>, vector<32x32xf32>
    %c0_1 = arith.constant 0 : index
    %c0_2 = arith.constant 0 : index
    %1 = vector.load %arg5[%c0_1, %c0_2] : memref<1x32xf32, #tpu.memory_space<vmem>>, vector<1x32xf32>
    %c0_i32 = arith.constant 0 : i32
    %2 = arith.cmpi eq, %arg1, %c0_i32 : i32
    %3 = arith.extui %2 : i1 to i32
    %c0_i32_3 = arith.constant 0 : i32
    %4 = arith.cmpi ne, %3, %c0_i32_3 : i32
    scf.if %4 {
      %c0_8 = arith.constant 0 : index
      %12 = memref.load %arg7[%c0_8] : memref<1xf32, #tpu.memory_space<smem>>
      %cst_9 = arith.constant 1.000000e+00 : f32
      %13 = arith.subf %cst_9, %12 : f32
      %c0_10 = arith.constant 0 : index
      %c0_11 = arith.constant 0 : index
      %14 = vector.load %arg2[%c0_10, %c0_11] : memref<32x32xf32, #tpu.memory_space<vmem>>, vector<32x32xf32>
      %c0_12 = arith.constant 0 : index
      %c0_13 = arith.constant 0 : index
      %15 = vector.load %arg2[%c0_12, %c0_13] : memref<32x32xf32, #tpu.memory_space<vmem>>, vector<32x32xf32>
      %16 = arith.subf %0, %15 : vector<32x32xf32>
      %17 = vector.broadcast %13 : f32 to vector<32x32xf32>
      %18 = arith.mulf %17, %16 : vector<32x32xf32>
      %19 = arith.addf %14, %18 : vector<32x32xf32>
      %c0_14 = arith.constant 0 : index
      %c0_15 = arith.constant 0 : index
      %20 = vector.load %arg8[%c0_14, %c0_15] : memref<32x32xf32, #tpu.memory_space<vmem>>, vector<32x32xf32>
      tpu.vector_store %arg8[%c0_14, %c0_15], %19 {strides = array<i32>} : memref<32x32xf32, #tpu.memory_space<vmem>>, vector<32x32xf32>,
      %c0_16 = arith.constant 0 : index
      %c0_17 = arith.constant 0 : index
      %21 = vector.load %arg4[%c0_16, %c0_17] : memref<1x32xf32, #tpu.memory_space<vmem>>, vector<1x32xf32>
      %c0_18 = arith.constant 0 : index
      %c0_19 = arith.constant 0 : index
      %22 = vector.load %arg4[%c0_18, %c0_19] : memref<1x32xf32, #tpu.memory_space<vmem>>, vector<1x32xf32>
      %23 = arith.subf %1, %22 : vector<1x32xf32>
      %24 = vector.broadcast %13 : f32 to vector<1x32xf32>
      %25 = arith.mulf %24, %23 : vector<1x32xf32>
      %26 = arith.addf %21, %25 : vector<1x32xf32>
      %c0_20 = arith.constant 0 : index
      %c0_21 = arith.constant 0 : index
      %27 = vector.load %arg9[%c0_20, %c0_21] : memref<1x32xf32, #tpu.memory_space<vmem>>, vector<1x32xf32>
      tpu.vector_store %arg9[%c0_20, %c0_21], %26 {strides = array<i32>} : memref<1x32xf32, #tpu.memory_space<vmem>>, vector<1x32xf32>,
    } else {
    }
    %c0_4 = arith.constant 0 : index
    %c0_5 = arith.constant 0 : index
    %5 = vector.load %arg6[%c0_4, %c0_5] : memref<8x32xf32, #tpu.memory_space<vmem>>, vector<8x32xf32>
    %6 = arith.truncf %5 : vector<8x32xf32> to vector<8x32xbf16>
    %7 = arith.truncf %0 : vector<32x32xf32> to vector<32x32xbf16>
    %cst = arith.constant dense<0.000000e+00> : vector<8x32xf32>
    %8 = tpu.matmul %6, %7, %cst {dimension_numbers = #tpu.dot_dimension_numbers<[1], [0], [0], [1], [0, 0, 1, 1], [], []>} : vector<8x32xbf16>, vector<32x32xbf16>, vector<8x32xf32> -> vector<8x32xf32>
    %9 = vector.broadcast %1 : vector<1x32xf32> to vector<8x32xf32>
    %10 = arith.addf %8, %9 : vector<8x32xf32>
    %c0_6 = arith.constant 0 : index
    %c0_7 = arith.constant 0 : index
    %11 = vector.load %arg10[%c0_6, %c0_7] : memref<8x32xf32, #tpu.memory_space<vmem>>, vector<8x32xf32>
    tpu.vector_store %arg10[%c0_6, %c0_7], %10 {strides = array<i32>} : memref<8x32xf32, #tpu.memory_space<vmem>>, vector<8x32xf32>,
    return
  }
  func.func @transform_0(%arg0: i32, %arg1: i32) -> (i32, i32) {
    %c0_i32 = arith.constant 0 : i32
    %c0_i32_0 = arith.constant 0 : i32
    return %c0_i32, %arg0 : i32, i32
  }
  func.func @transform_1(%arg0: i32, %arg1: i32) -> (i32, i32) {
    %c0_i32 = arith.constant 0 : i32
    %c0_i32_0 = arith.constant 0 : i32
    return %c0_i32, %arg0 : i32, i32
  }
  func.func @transform_2(%arg0: i32, %arg1: i32) -> (i32, i32) {
    %c0_i32 = arith.constant 0 : i32
    %c0_i32_0 = arith.constant 0 : i32
    return %c0_i32, %arg0 : i32, i32
  }
  func.func @transform_3(%arg0: i32, %arg1: i32) -> (i32, i32) {
    %c0_i32 = arith.constant 0 : i32
    %c0_i32_0 = arith.constant 0 : i32
    return %c0_i32, %arg0 : i32, i32
  }
  func.func @transform_4(%arg0: i32, %arg1: i32) -> (i32, i32) {
    %c0_i32 = arith.constant 0 : i32
    %c0_i32_0 = arith.constant 0 : i32
    return %arg1, %c0_i32 : i32, i32
  }
  func.func @transform_5(%arg0: i32, %arg1: i32) -> i32 {
    %c0_i32 = arith.constant 0 : i32
    %c0_i32_0 = arith.constant 0 : i32
    return %c0_i32 : i32
  }
  func.func @transform_6(%arg0: i32, %arg1: i32) -> (i32, i32) {
    %c0_i32 = arith.constant 0 : i32
    %c0_i32_0 = arith.constant 0 : i32
    return %c0_i32, %arg0 : i32, i32
  }
  func.func @transform_7(%arg0: i32, %arg1: i32) -> (i32, i32) {
    %c0_i32 = arith.constant 0 : i32
    %c0_i32_0 = arith.constant 0 : i32
    return %c0_i32, %arg0 : i32, i32
  }
  func.func @transform_8(%arg0: i32, %arg1: i32) -> (i32, i32) {
    %c0_i32 = arith.constant 0 : i32
    return %arg1, %arg0 : i32, i32
  }
}

</mosaic_0001>

<bundles_post_ra>
// kernel: fused_train_step.1
= control target key start
LH: loop header
LB: loop body
LE: loop exit
PB: predicated region body
PF: predicated region fallthrough
CT: control target
= control target key end

     0   :  { %15 = vsyncpa [#allocation4], 0  ;;  %s493_s0 = inlined_call_operand.hbm [shape: f32[32,32], index: 0, kind: input, shape index: {}, may-alias: {0,6}]   ;;  %s494_s1 = inlined_call_operand.hbm [shape: f32[32,32], index: 1, kind: input, shape index: {}]   ;;  %s495_s2 = inlined_call_operand.hbm [shape: f32[1,32], index: 2, kind: input, shape index: {}, may-alias: {2,7}]   ;;  %s496_s3 = inlined_call_operand.vmem [shape: f32[1,32], index: 3, kind: input, shape index: {}]   ;;  %s497_s4 = inlined_call_operand.hbm [shape: f32[8,32], index: 4, kind: input, shape index: {}]   ;;  %s498_s5 = inlined_call_operand.<no memory space> [shape: f32[1], index: 5, kind: input, shape index: {}]   ;;  %s499_s6 = inlined_call_operand.hbm [shape: f32[32,32], index: 6, kind: output, shape index: {0}, may-alias: {0,6}]   ;;  %s500_s7 = inlined_call_operand.hbm [shape: f32[1,32], index: 7, kind: output, shape index: {1}, may-alias: {2,7}]   ;;  %s501_s8 = inlined_call_operand.hbm [shape: f32[8,32], index: 8, kind: output, shape index: {2}]  }
   0x1   :  { %16 = vsyncpa [#allocation7], 0 }
   0x2   :  { %17 = vsyncpa [#allocation10], 0 }
   0x3   :  { %18 = vsyncpa [#allocation5], 0 }
   0x4   :  { %19 = vsyncpa [#allocation13], 0  ;;  %s37_s29 = sshll.u32 %s494_s1, 4  ;;  %s394_s30 = smov [#allocation6]   ;;  %s38_s29 = int_to_ptr.hbm [resolvable:$true] %s37_s29 }
   0x5   :  { %s39_s9 = sshll.u32 %s394_s30, 4  ;;  %s24_s12 = sshll.u32 %s493_s0, 4  ;;  %s40_s9 = int_to_ptr.vmem [resolvable:$true] %s39_s9  ;;  %s25_s12 = int_to_ptr.hbm [resolvable:$true] %s24_s12 }
   0x6   :  { %s395_s13 = smov 128   ;;  %s396_s14 = smov 8  }
   0x7   :  { %45 = dma.hbm_to_vmem [thread:$0]  %s38_s29, 512, %s40_s9, [#allocation7], %s395_s13, %s395_s13, %s396_s14  }
   0x8   :  { %s397_s15 = smov [#allocation3]   ;;  %s51_s1 = sshll.u32 %s495_s2, 4  ;;  %s52_s1 = int_to_ptr.hbm [resolvable:$true] %s51_s1 }
   0x9   :  { %s26_s16 = sshll.u32 %s397_s15, 4  ;;  %s64_s20 = sshll.u32 %s497_s4, 4  ;;  %s27_s16 = int_to_ptr.vmem [resolvable:$true] %s26_s16  ;;  %s65_s20 = int_to_ptr.hbm [resolvable:$true] %s64_s20 }
   0xa   :  { %32 = dma.hbm_to_vmem [thread:$0]  %s25_s12, 512, %s27_s16, [#allocation4], %s395_s13, %s395_s13, %s396_s14  }
   0xb   :  { %s398_s21 = smov [#allocation8]   ;;  %s399_s23 = smov [#allocation9]  }
   0xc   :  { %s53_s22 = sshll.u32 %s398_s21, 4  ;;  %s66_s24 = sshll.u32 %s399_s23, 4  ;;  %s54_s22 = int_to_ptr.vmem [resolvable:$true] %s53_s22  ;;  %s67_s24 = int_to_ptr.vmem [resolvable:$true] %s66_s24 }
   0xd   :  { %56 = dma.hbm_to_vmem [thread:$0]  %s52_s1, 16, %s54_s22, [#allocation7]  }
   0xe   :  { %69 = dma.hbm_to_vmem [thread:$0]  %s65_s20, 128, %s67_s24, [#allocation10]  }
   0xf   :  { %384 = dma.done.wait [#allocation4], 512  }
  0x10   :  { %385 = vsyncadd [#allocation4], 4294966784 }
  0x11   :  { %386 = dma.done.wait [#allocation7], 528  }
  0x12   :  { %387 = vsyncadd [#allocation7], 4294966768 }
  0x13   :  { %388 = dma.done.wait [#allocation10], 128  }
  0x14   :  { %389 = vsyncadd [#allocation10], 4294967168  ;;  %s99_s26 = ssub.f32 1.0, %s498_s5  ;;  %v91_v0 = vld [vmem:[#allocation6 + $0x10] sm:$0xff]  ;;  %v92_v1 = vld [vmem:[#allocation6 + $0x18] sm:$0xff]  ;;  %vm117_vm0 = vcmask 261120  }
  0x15   :  { %v102_v2 = vld [vmem:[#allocation3 + $0x10] sm:$0xff]  ;;  %v103_v4 = vld [vmem:[#allocation3 + $0x18] sm:$0xff]  ;;  %v131_v6 = vpack.c.bf16 %v92_v1, %v91_v0  ;;  %v89_v7 = vld [vmem:[#allocation6] sm:$0xff]  ;;  %s400_s4 = smov [#allocation11]   ;;  %s159_s29 = sshll.u32 %s499_s6, 4  ;;  %vm126_vm1 = vcmask 253952   ;;  %s160_s29 = int_to_ptr.hbm [resolvable:$true] %s159_s29 }
  0x16   :  { %v108_v3 = vstv %s99_s26  ;;  %v106_v5 = vsub.f32 %v91_v0, %v102_v2  ;;  %v90_v8 = vld [vmem:[#allocation6 + $0x8] sm:$0xff]  ;;  %v107_v9 = vsub.f32 %v92_v1, %v103_v4  ;;  %v100_v10 = vld [vmem:[#allocation3] sm:$0xff]  ;;  %s157_s5 = sshll.u32 %s400_s4, 4  ;;  %s401_s10 = smov [#allocation12]   ;;  %s158_s5 = int_to_ptr.vmem [resolvable:$true] %s157_s5 }
  0x17   :  { %v101_v11 = vld [vmem:[#allocation3 + $0x8] sm:$0xff]  ;;  %145 = vmatpush.bf16.msra.mxu0 %v131_v6  ;;  %v104_v13 = vsub.f32 %v89_v7, %v100_v10  ;;  %v130_v15 = vpack.c.bf16 %v90_v8, %v89_v7  ;;  %v93_v25 = vld [vmem:[%s496_s3] sm:$0x1]  ;;  %s171_s11 = sshll.u32 %s401_s10, 4  ;;  %s173_s16 = sshll.u32 %s500_s7, 4  ;;  %s172_s11 = int_to_ptr.vmem [resolvable:$true] %s171_s11  ;;  %s174_s16 = int_to_ptr.hbm [resolvable:$true] %s173_s16 }
  0x18   :  { %v111_v12 = vmul.f32 %v108_v3, %v106_v5  ;;  %v105_v14 = vsub.f32 %v90_v8, %v101_v11  ;;  %v128_v16 = vld [vmem:[#allocation9] sm:$0xff]  ;;  %v112_v17 = vmul.f32 %v108_v3, %v107_v9  ;;  %v122_v26 = vld [vmem:[#allocation8] sm:$0x1]  ;;  %s184_s0 = sshll.u32 %s501_s8, 4  ;;  %s185_s0 = int_to_ptr.hbm [resolvable:$true] %s184_s0 }
  0x19   :  { %v109_v19 = vmul.f32 %v108_v3, %v104_v13  ;;  %v129_v22 = vpack.c.bf16 %v128_v16, %v128_v16  ;;  %v123_v27 = vsub.f32 %v93_v25, %v122_v26  ;;  %v215_v30 = vld [vmem:[%s496_s3] ss:$0 sm:$0xff] }
  0x1a   :  { %v115_v18 = vadd.f32 %v111_v12, %v102_v2  ;;  %v110_v20 = vmul.f32 %v108_v3, %v105_v14  ;;  %v116_v21 = vadd.f32 %v112_v17, %v103_v4 }
  0x1b   :  { %v113_v23 = vadd.f32 %v109_v19, %v100_v10  ;;  %146 = vmatpush.bf16.msra.mxu0 %v130_v15  ;;  %v124_v28 = vmul.f32 %v123_v27, %v108_v3 }
  0x1c   :  { %120 = vst.msk [vmem:[#allocation11 + $0x10] sm:$0xff] %vm117_vm0, %v115_v18  ;;  %v114_v24 = vadd.f32 %v110_v20, %v101_v11 }
  0x1d   :  { %121 = vst.msk [vmem:[#allocation11 + $0x18] sm:$0xff] %vm117_vm0, %v116_v21  ;;  %v125_v29 = vadd.f32 %v124_v28, %v122_v26 }
  0x1e   :  { %118 = vst.msk [vmem:[#allocation11] sm:$0xff] %vm117_vm0, %v113_v23  ;;  %205 = vmatmul.msk.bf16.vlgmr.msra.gmra.mxu0 %vm117_vm0, %v129_v22 }
  0x1f   :  { %119 = vst.msk [vmem:[#allocation11 + $0x8] sm:$0xff] %vm117_vm0, %v114_v24 }
  0x20   :  { %165 = dma.vmem_to_hbm [thread:$0]  %s158_s5, 512, %s160_s29, [#allocation5], %s395_s13, %s395_s13, %s396_s14   ;;  %127 = vst.msk [vmem:[#allocation12] sm:$0x1] %vm126_vm1, %v125_v29 }
  0x21   :  { %176 = dma.vmem_to_hbm [thread:$0]  %s172_s11, 16, %s174_s16, [#allocation13]  }
  0x22   :  { %s402_s14 = smov [#allocation14]  }
  0x23   :  { %s182_s17 = sshll.u32 %s402_s14, 4  ;;  %s183_s17 = int_to_ptr.vmem [resolvable:$true] %s182_s17 }
  0x9b   :  { %v148_v31 = vpop.f32.mrf.mxu0 }
  0x9c   :  { %v149_v32 = vadd.f32 %v215_v30, %v148_v31 }
  0x9e   :  { %152 = vst.msk [vmem:[#allocation14] sm:$0xff] %vm117_vm0, %v149_v32 }
  0x9f   :  { %187 = dma.vmem_to_hbm [thread:$0]  %s183_s17, 128, %s185_s0, [#allocation13]  }
  0xa3   :  { %v150_v33 = vpop.f32.mrf.mxu0 }
  0xa4   :  { %390 = dma.done.wait [#allocation5], 512  }
  0xa5   :  { %391 = vsyncadd [#allocation5], 4294966784 }
  0xa6   :  { %392 = dma.done.wait [#allocation13], 144  }
  0xa7   :  { %393 = vsyncadd [#allocation13], 4294967152 }
  0xa8   :  { %200 = vsyncpa [#allocation4], 1 }
  0xa9   :  { %201 = vsyncpa [#allocation7], 1 }
  0xaa   :  { %202 = vsyncpa [#allocation10], 1 }
  0xab   :  { %203 = vsyncpa [#allocation5], 1 }
  0xac   :  { %204 = vsyncpa [#allocation13], 1 }

</bundles_post_ra>
